<compile_context>
chip_gen: v7x
topology: tpu7x:2x2x1
jax: 0.10.0
libtpu: 0.0.40
codegen_flags: <defaults>
</compile_context>

<pallas_src>
import math

import jax
import jax.numpy as jnp
from jax.experimental import pallas as pl
from jax.experimental.pallas import tpu as pltpu

_EPS = 1e-5
_IN_FEATURES = 784
_NUM_CLASSES = 10
_PAD_CLASSES = 128          # lane-dense output width
_NEG_INF = -1e30            # bias for padded logit lanes


def _mlp_kernel(x_ref, w1_ref, b1_ref, w2_ref, b2_ref, w3_ref, b3_ref, out_ref):
    # x_ref: (TB, 784) f32; weights bf16 (BN already folded); biases f32.
    x = x_ref[...].astype(jnp.bfloat16)

    # Linear(784, 64) + ReLU
    h = jnp.dot(x, w1_ref[...], preferred_element_type=jnp.float32) + b1_ref[...]
    h = jnp.maximum(h, 0.0)

    # (BN1 folded) Linear(64, 32) + ReLU
    h = jnp.dot(h.astype(jnp.bfloat16), w2_ref[...],
                preferred_element_type=jnp.float32) + b2_ref[...]
    h = jnp.maximum(h, 0.0)

    # (BN2 folded) Linear(32, 10) padded to 128 lanes; padded lanes get -1e30.
    logits = jnp.dot(h.astype(jnp.bfloat16), w3_ref[...],
                     preferred_element_type=jnp.float32) + b3_ref[...]

    # log_softmax(dim=1); padded lanes are ~-1e30 -> exp underflows to 0.
    m = jnp.max(logits, axis=1, keepdims=True)
    lse = jnp.log(jnp.sum(jnp.exp(logits - m), axis=1, keepdims=True)) + m
    out_ref[...] = logits - lse


def _round_up(n, m):
    return ((n + m - 1) // m) * m


def prepare_params(raw):
    """Fold eval-mode BN into downstream linears, cast for the MXU, pad layer 3."""
    def fold(bn, w, b):
        gamma, beta, mean, var = bn[0], bn[1], bn[2], bn[3]
        scale = gamma * jax.lax.rsqrt(var + _EPS)      # scalar (single channel)
        shift = beta - mean * scale
        w_f = scale * w
        b_f = b + shift * jnp.sum(w, axis=0, keepdims=True)
        return w_f, b_f

    w1, b1 = raw["w1"], raw["b1"]
    w2, b2 = fold(raw["bn1"], raw["w2"], raw["b2"])
    w3, b3 = fold(raw["bn2"], raw["w3"], raw["b3"])

    pad = _PAD_CLASSES - _NUM_CLASSES
    w3 = jnp.concatenate([w3, jnp.zeros((w3.shape[0], pad), jnp.float32)], axis=1)
    b3 = jnp.concatenate([b3, jnp.full((1, pad), _NEG_INF, jnp.float32)], axis=1)

    return dict(
        w1=w1.astype(jnp.bfloat16), b1=b1.astype(jnp.float32),
        w2=w2.astype(jnp.bfloat16), b2=b2.astype(jnp.float32),
        w3=w3.astype(jnp.bfloat16), b3=b3.astype(jnp.float32),
    )


def quantized_mlp_forward(x_nchw, prepared, *, max_batch_tile=512):
    """x_nchw: (B, 1, 28, 28) float32 -> (B, 10) log-probabilities."""
    B = x_nchw.shape[0]
    D = _IN_FEATURES
    x2d = x_nchw.reshape(B, D)                         # nn.Flatten (free reshape)

    TB = min(max_batch_tile, _round_up(B, 8))          # batch tile (mult. of 8)
    grid = (pl.cdiv(B, TB),)

    const = lambda i: (0, 0)                           # weights: VMEM-resident

    cost = pl.CostEstimate(
        flops=2 * B * (D * 64 + 64 * 32 + 32 * _NUM_CLASSES),
        transcendentals=B * (_NUM_CLASSES + 1),
        bytes_accessed=(B * D * 4
                        + (D * 64 + 64 * 32 + 32 * _PAD_CLASSES) * 2
                        + (64 + 32 + _PAD_CLASSES) * 4
                        + B * _PAD_CLASSES * 4),
    )

    out_padded = pl.pallas_call(
        _mlp_kernel,
        out_shape=jax.ShapeDtypeStruct((B, _PAD_CLASSES), jnp.float32),
        grid=grid,
        in_specs=[
            pl.BlockSpec((TB, D), lambda i: (i, 0)),            # x (pipelined)
            pl.BlockSpec((D, 64), const),                       # w1
            pl.BlockSpec((1, 64), const),                       # b1
            pl.BlockSpec((64, 32), const),                      # w2 (BN1 folded)
            pl.BlockSpec((1, 32), const),                       # b2
            pl.BlockSpec((32, _PAD_CLASSES), const),            # w3 (BN2 folded, padded)
            pl.BlockSpec((1, _PAD_CLASSES), const),             # b3 (padded)
        ],
        out_specs=pl.BlockSpec((TB, _PAD_CLASSES), lambda i: (i, 0)),
        compiler_params=pltpu.CompilerParams(
            dimension_semantics=("parallel",)),
        cost_estimate=cost,
    )(x2d, prepared["w1"], prepared["b1"], prepared["w2"], prepared["b2"],
      prepared["w3"], prepared["b3"])

    return out_padded[:, :_NUM_CLASSES]


def init_params(key):
    """Deterministic init mirroring PyTorch nn.Linear; BN stats randomized so
    the BN fold is actually exercised (fresh-module defaults are gamma=1,
    beta=0, mean=0, var=1)."""
    def linear(k, fan_in, fan_out):
        kw, kb = jax.random.split(k)
        bound = 1.0 / math.sqrt(fan_in)
        w = jax.random.uniform(kw, (fan_in, fan_out), jnp.float32, -bound, bound)
        b = jax.random.uniform(kb, (1, fan_out), jnp.float32, -bound, bound)
        return w, b

    def bn_stats(k):
        # [gamma, beta, running_mean, running_var]
        kg, kb_, km, kv = jax.random.split(k, 4)
        return jnp.stack([
            jax.random.uniform(kg, (), jnp.float32, 0.5, 1.5),
            jax.random.uniform(kb_, (), jnp.float32, -0.5, 0.5),
            jax.random.uniform(km, (), jnp.float32, -0.5, 0.5),
            jax.random.uniform(kv, (), jnp.float32, 0.5, 1.5),
        ])

    k1, k2, k3, k4, k5 = jax.random.split(key, 5)
    w1, b1 = linear(k1, _IN_FEATURES, 64)
    w2, b2 = linear(k2, 64, 32)
    w3, b3 = linear(k3, 32, _NUM_CLASSES)
    return dict(w1=w1, b1=b1, bn1=bn_stats(k4),
                w2=w2, b2=b2, bn2=bn_stats(k5),
                w3=w3, b3=b3)


def reference_forward(x_nchw, raw):
    """Pure-JAX f32 mirror of the PyTorch forward (BN eval-mode affine)."""
    x = x_nchw.reshape(x_nchw.shape[0], -1)

    def bn(h, p):
        g, b, m, v = p[0], p[1], p[2], p[3]
        return (h - m) * jax.lax.rsqrt(v + _EPS) * g + b

    h = jnp.maximum(x @ raw["w1"] + raw["b1"], 0.0)
    h = bn(h, raw["bn1"])
    h = jnp.maximum(h @ raw["w2"] + raw["b2"], 0.0)
    h = bn(h, raw["bn2"])
    logits = h @ raw["w3"] + raw["b3"]
    return jax.nn.log_softmax(logits, axis=1)


if __name__ == "__main__":
    key = jax.random.PRNGKey(0)
    k_params, k_x = jax.random.split(key)

    raw = init_params(k_params)
    prepared = prepare_params(raw)
    x = jax.random.normal(k_x, (8, 1, 28, 28), dtype=jnp.float32)  # MNIST NCHW

    out = quantized_mlp_forward(x, prepared)
    out = jax.block_until_ready(out)

    assert out.shape == (8, _NUM_CLASSES) and out.dtype == jnp.float32
    # log_softmax rows must sum (in prob space) to ~1
    assert jnp.allclose(jnp.sum(jnp.exp(out), axis=1), 1.0, atol=1e-3)
    # bf16 matmuls + folded BN vs fp32 reference: loose tolerance
    ref = reference_forward(x, raw)
    assert float(jnp.max(jnp.abs(out - ref))) < 0.1
    print("KERNEL_OK")
</pallas_src>

<mosaic_0001>
module attributes {stable_mosaic.version = 11 : i64} {
  func.func @_mlp_kernel(%arg0: i32, %arg1: memref<8x784xf32, #tpu.memory_space<vmem>>, %arg2: memref<784x64xbf16, #tpu.memory_space<vmem>>, %arg3: memref<1x64xf32, #tpu.memory_space<vmem>>, %arg4: memref<64x32xbf16, #tpu.memory_space<vmem>>, %arg5: memref<1x32xf32, #tpu.memory_space<vmem>>, %arg6: memref<32x128xbf16, #tpu.memory_space<vmem>>, %arg7: memref<1x128xf32, #tpu.memory_space<vmem>>, %arg8: memref<8x128xf32, #tpu.memory_space<vmem>>) attributes {dimension_semantics = [#tpu.dimension_semantics<parallel>], iteration_bounds = array<i64: 1>, scalar_prefetch = 0 : i64, scratch_operands = 0 : i64, tpu.core_type = #tpu.core_type<tc>, window_params = [{transform_indices = @transform_0, window_bounds = array<i64: 8, 784>}, {pipeline_mode = #tpu.pipeline_mode<synchronous>, transform_indices = @transform_1, window_bounds = array<i64: 784, 64>}, {pipeline_mode = #tpu.pipeline_mode<synchronous>, transform_indices = @transform_2, window_bounds = array<i64: 1, 64>}, {pipeline_mode = #tpu.pipeline_mode<synchronous>, transform_indices = @transform_3, window_bounds = array<i64: 64, 32>}, {pipeline_mode = #tpu.pipeline_mode<synchronous>, transform_indices = @transform_4, window_bounds = array<i64: 1, 32>}, {pipeline_mode = #tpu.pipeline_mode<synchronous>, transform_indices = @transform_5, window_bounds = array<i64: 32, 128>}, {pipeline_mode = #tpu.pipeline_mode<synchronous>, transform_indices = @transform_6, window_bounds = array<i64: 1, 128>}, {transform_indices = @transform_7, window_bounds = array<i64: 8, 128>}]} {
    %c0 = arith.constant 0 : index
    %c0_0 = arith.constant 0 : index
    %0 = vector.load %arg1[%c0, %c0_0] : memref<8x784xf32, #tpu.memory_space<vmem>>, vector<8x784xf32>
    %1 = arith.truncf %0 : vector<8x784xf32> to vector<8x784xbf16>
    %c0_1 = arith.constant 0 : index
    %c0_2 = arith.constant 0 : index
    %2 = vector.load %arg2[%c0_1, %c0_2] : memref<784x64xbf16, #tpu.memory_space<vmem>>, vector<784x64xbf16>
    %cst = arith.constant dense<0.000000e+00> : vector<8x64xf32>
    %3 = tpu.matmul %1, %2, %cst {dimension_numbers = #tpu.dot_dimension_numbers<[1], [0], [0], [1], [0, 0, 1, 1], [], []>} : vector<8x784xbf16>, vector<784x64xbf16>, vector<8x64xf32> -> vector<8x64xf32>
    %c0_3 = arith.constant 0 : index
    %c0_4 = arith.constant 0 : index
    %4 = vector.load %arg3[%c0_3, %c0_4] : memref<1x64xf32, #tpu.memory_space<vmem>>, vector<1x64xf32>
    %5 = vector.broadcast %4 : vector<1x64xf32> to vector<8x64xf32>
    %6 = arith.addf %3, %5 : vector<8x64xf32>
    %cst_5 = arith.constant 0.000000e+00 : f32
    %7 = vector.broadcast %cst_5 : f32 to vector<8x64xf32>
    %8 = arith.maximumf %6, %7 : vector<8x64xf32>
    %9 = arith.truncf %8 : vector<8x64xf32> to vector<8x64xbf16>
    %c0_6 = arith.constant 0 : index
    %c0_7 = arith.constant 0 : index
    %10 = vector.load %arg4[%c0_6, %c0_7] : memref<64x32xbf16, #tpu.memory_space<vmem>>, vector<64x32xbf16>
    %cst_8 = arith.constant dense<0.000000e+00> : vector<8x32xf32>
    %11 = tpu.matmul %9, %10, %cst_8 {dimension_numbers = #tpu.dot_dimension_numbers<[1], [0], [0], [1], [0, 0, 1, 1], [], []>} : vector<8x64xbf16>, vector<64x32xbf16>, vector<8x32xf32> -> vector<8x32xf32>
    %c0_9 = arith.constant 0 : index
    %c0_10 = arith.constant 0 : index
    %12 = vector.load %arg5[%c0_9, %c0_10] : memref<1x32xf32, #tpu.memory_space<vmem>>, vector<1x32xf32>
    %13 = vector.broadcast %12 : vector<1x32xf32> to vector<8x32xf32>
    %14 = arith.addf %11, %13 : vector<8x32xf32>
    %cst_11 = arith.constant 0.000000e+00 : f32
    %15 = vector.broadcast %cst_11 : f32 to vector<8x32xf32>
    %16 = arith.maximumf %14, %15 : vector<8x32xf32>
    %17 = arith.truncf %16 : vector<8x32xf32> to vector<8x32xbf16>
    %c0_12 = arith.constant 0 : index
    %c0_13 = arith.constant 0 : index
    %18 = vector.load %arg6[%c0_12, %c0_13] : memref<32x128xbf16, #tpu.memory_space<vmem>>, vector<32x128xbf16>
    %cst_14 = arith.constant dense<0.000000e+00> : vector<8x128xf32>
    %19 = tpu.matmul %17, %18, %cst_14 {dimension_numbers = #tpu.dot_dimension_numbers<[1], [0], [0], [1], [0, 0, 1, 1], [], []>} : vector<8x32xbf16>, vector<32x128xbf16>, vector<8x128xf32> -> vector<8x128xf32>
    %c0_15 = arith.constant 0 : index
    %c0_16 = arith.constant 0 : index
    %20 = vector.load %arg7[%c0_15, %c0_16] : memref<1x128xf32, #tpu.memory_space<vmem>>, vector<1x128xf32>
    %21 = vector.broadcast %20 : vector<1x128xf32> to vector<8x128xf32>
    %22 = arith.addf %19, %21 : vector<8x128xf32>
    %cst_17 = arith.constant dense<0xFF800000> : vector<8xf32>
    %23 = vector.multi_reduction <maximumf>, %22, %cst_17 [1] : vector<8x128xf32> to vector<8xf32>
    %24 = vector.shape_cast %23 : vector<8xf32> to vector<8x1xf32>
    %25 = vector.broadcast %24 : vector<8x1xf32> to vector<8x128xf32>
    %26 = arith.subf %22, %25 : vector<8x128xf32>
    %27 = math.exp %26 : vector<8x128xf32>
    %cst_18 = arith.constant dense<0.000000e+00> : vector<8xf32>
    %28 = vector.multi_reduction <add>, %27, %cst_18 [1] : vector<8x128xf32> to vector<8xf32>
    %29 = vector.shape_cast %28 : vector<8xf32> to vector<8x1xf32>
    %30 = math.log %29 : vector<8x1xf32>
    %31 = arith.addf %30, %24 : vector<8x1xf32>
    %32 = vector.broadcast %31 : vector<8x1xf32> to vector<8x128xf32>
    %33 = arith.subf %22, %32 : vector<8x128xf32>
    %c0_19 = arith.constant 0 : index
    %c0_20 = arith.constant 0 : index
    %34 = vector.load %arg8[%c0_19, %c0_20] : memref<8x128xf32, #tpu.memory_space<vmem>>, vector<8x128xf32>
    tpu.vector_store %arg8[%c0_19, %c0_20], %33 {strides = array<i32>} : memref<8x128xf32, #tpu.memory_space<vmem>>, vector<8x128xf32>,
    return
  }
  func.func @transform_0(%arg0: i32) -> (i32, i32) {
    %c0_i32 = arith.constant 0 : i32
    %c0_i32_0 = arith.constant 0 : i32
    return %arg0, %c0_i32 : i32, i32
  }
  func.func @transform_1(%arg0: i32) -> (i32, i32) {
    %c0_i32 = arith.constant 0 : i32
    %c0_i32_0 = arith.constant 0 : i32
    %c0_i32_1 = arith.constant 0 : i32
    return %c0_i32, %c0_i32_0 : i32, i32
  }
  func.func @transform_2(%arg0: i32) -> (i32, i32) {
    %c0_i32 = arith.constant 0 : i32
    %c0_i32_0 = arith.constant 0 : i32
    %c0_i32_1 = arith.constant 0 : i32
    return %c0_i32, %c0_i32_0 : i32, i32
  }
  func.func @transform_3(%arg0: i32) -> (i32, i32) {
    %c0_i32 = arith.constant 0 : i32
    %c0_i32_0 = arith.constant 0 : i32
    %c0_i32_1 = arith.constant 0 : i32
    return %c0_i32, %c0_i32_0 : i32, i32
  }
  func.func @transform_4(%arg0: i32) -> (i32, i32) {
    %c0_i32 = arith.constant 0 : i32
    %c0_i32_0 = arith.constant 0 : i32
    %c0_i32_1 = arith.constant 0 : i32
    return %c0_i32, %c0_i32_0 : i32, i32
  }
  func.func @transform_5(%arg0: i32) -> (i32, i32) {
    %c0_i32 = arith.constant 0 : i32
    %c0_i32_0 = arith.constant 0 : i32
    %c0_i32_1 = arith.constant 0 : i32
    return %c0_i32, %c0_i32_0 : i32, i32
  }
  func.func @transform_6(%arg0: i32) -> (i32, i32) {
    %c0_i32 = arith.constant 0 : i32
    %c0_i32_0 = arith.constant 0 : i32
    %c0_i32_1 = arith.constant 0 : i32
    return %c0_i32, %c0_i32_0 : i32, i32
  }
  func.func @transform_7(%arg0: i32) -> (i32, i32) {
    %c0_i32 = arith.constant 0 : i32
    %c0_i32_0 = arith.constant 0 : i32
    return %arg0, %c0_i32 : i32, i32
  }
}

</mosaic_0001>

<bundles_post_ra>
// kernel: tpu_custom_call.1
= control target key start
LH: loop header
LB: loop body
LE: loop exit
PB: predicated region body
PF: predicated region fallthrough
CT: control target
= control target key end

     0   :  { %v1034_v44 = vmov 0.0   ;;  %vm1035_vm0 = vmmov 0   ;;  %vm441_vm1 = vcmask 130048   ;;  %s1297_s0 = inlined_call_operand.vmem [shape: f32[8,784], index: 0, kind: input, shape index: {}]   ;;  %s1298_s1 = inlined_call_operand.vmem [shape: bf16[784,64], index: 1, kind: input, shape index: {}]   ;;  %s1299_s2 = inlined_call_operand.vmem [shape: f32[1,64], index: 2, kind: input, shape index: {}]   ;;  %s1300_s3 = inlined_call_operand.vmem [shape: bf16[64,32], index: 3, kind: input, shape index: {}]   ;;  %s1301_s4 = inlined_call_operand.vmem [shape: f32[1,32], index: 4, kind: input, shape index: {}]   ;;  %s1302_s5 = inlined_call_operand.vmem [shape: bf16[32,128], index: 5, kind: input, shape index: {}]   ;;  %s1303_s6 = inlined_call_operand.vmem [shape: f32[1,128], index: 6, kind: input, shape index: {}]   ;;  %s1304_s7 = inlined_call_operand.hbm [shape: f32[8,128], index: 7, kind: output, shape index: {}]  }
   0x1   :  { %v951_v0 = vld [vmem:[%s1298_s1 + $0x40] sm:$0xff]   ;;  %v955_v4 = vld [vmem:[%s1298_s1 + $0x48] sm:$0xff]   ;;  %v959_v8 = vld [vmem:[%s1298_s1 + $0x50] sm:$0xff]  }
   0x2   :  { %v952_v1 = vld [vmem:[%s1298_s1] sm:$0xff]   ;;  %846 = vmatprep.subr.bf16.mxu0 %v951_v0  ;;  %v956_v5 = vld [vmem:[%s1298_s1 + $0x8] sm:$0xff]   ;;  %v960_v9 = vld [vmem:[%s1298_s1 + $0x10] sm:$0xff]  }
   0x3   :  { %v953_v2 = vld [vmem:[%s1298_s1 + $0xc0] sm:$0xff]   ;;  %847 = vmatpush3.bf16.msra.mxu0 %v952_v1  ;;  %v957_v6 = vld [vmem:[%s1298_s1 + $0xc8] sm:$0xff]   ;;  %v961_v10 = vld [vmem:[%s1298_s1 + $0xd0] sm:$0xff]  }
   0x4   :  { %v954_v3 = vld [vmem:[%s1298_s1 + $0x80] sm:$0xff]   ;;  %868 = vmatprep.subr.bf16.mxu1 %v953_v2  ;;  %848 = vmatprep.subr.bf16.mxu0 %v955_v4  ;;  %v958_v7 = vld [vmem:[%s1298_s1 + $0x88] sm:$0xff]   ;;  %v962_v11 = vld [vmem:[%s1298_s1 + $0x90] sm:$0xff]  }
   0x5   :  { %869 = vmatpush3.bf16.msra.mxu1 %v954_v3  ;;  %v963_v12 = vld [vmem:[%s1298_s1 + $0x58] sm:$0xff]   ;;  %v967_v16 = vld [vmem:[%s1298_s1 + $0x60] sm:$0xff]   ;;  %v971_v20 = vld [vmem:[%s1298_s1 + $0x68] sm:$0xff]  }
   0x6   :  { %870 = vmatprep.subr.bf16.mxu1 %v957_v6  ;;  %v964_v13 = vld [vmem:[%s1298_s1 + $0x18] sm:$0xff]   ;;  %v968_v17 = vld [vmem:[%s1298_s1 + $0x20] sm:$0xff]   ;;  %v972_v21 = vld [vmem:[%s1298_s1 + $0x28] sm:$0xff]  }
   0x7   :  { %849 = vmatpush3.bf16.msra.mxu0 %v956_v5  ;;  %v965_v14 = vld [vmem:[%s1298_s1 + $0xd8] sm:$0xff]   ;;  %v969_v18 = vld [vmem:[%s1298_s1 + $0xe0] sm:$0xff]   ;;  %v973_v22 = vld [vmem:[%s1298_s1 + $0xe8] sm:$0xff]  }
   0x8   :  { %850 = vmatprep.subr.bf16.mxu0 %v959_v8  ;;  %v966_v15 = vld [vmem:[%s1298_s1 + $0x98] sm:$0xff]   ;;  %v970_v19 = vld [vmem:[%s1298_s1 + $0xa0] sm:$0xff]   ;;  %v974_v23 = vld [vmem:[%s1298_s1 + $0xa8] sm:$0xff]  }
   0x9   :  { %871 = vmatpush3.bf16.msra.mxu1 %v958_v7  ;;  %v975_v24 = vld [vmem:[%s1298_s1 + $0x70] sm:$0xff]   ;;  %v979_v28 = vld [vmem:[%s1298_s1 + $0x78] sm:$0xff]   ;;  %v29_v31 = vld [vmem:[%s1297_s0 + $0x8] sm:$0xff] }
   0xa   :  { %872 = vmatprep.subr.bf16.mxu1 %v961_v10  ;;  %v976_v25 = vld [vmem:[%s1298_s1 + $0x30] sm:$0xff]   ;;  %v980_v29 = vld [vmem:[%s1298_s1 + $0x38] sm:$0xff]   ;;  %v36_v32 = vpack.c.bf16 %v29_v31, %v29_v31  ;;  %v28_v34 = vld [vmem:[%s1297_s0] sm:$0xff] }
   0xb   :  { %851 = vmatpush3.bf16.msra.mxu0 %v960_v9  ;;  %v977_v26 = vld [vmem:[%s1298_s1 + $0xf0] sm:$0xff]   ;;  %v981_v30 = vld [vmem:[%s1298_s1 + $0xf8] sm:$0xff]   ;;  %v35_v35 = vpack.c.bf16 %v28_v34, %v28_v34  ;;  %v983_v36 = vld [vmem:[%s1298_s1 + $0x140] sm:$0xff]  }
   0xc   :  { %852 = vmatprep.subr.bf16.mxu0 %v963_v12  ;;  %v978_v27 = vld [vmem:[%s1298_s1 + $0xb0] sm:$0xff]   ;;  %v982_v33 = vld [vmem:[%s1298_s1 + $0xb8] sm:$0xff]   ;;  %477 = vmatprep.mubr.bf16.mxu0 %v36_v32  ;;  %v984_v39 = vld [vmem:[%s1298_s1 + $0x100] sm:$0xff]  }
   0xd   :  { %873 = vmatpush3.bf16.msra.mxu1 %v962_v11  ;;  %v31_v37 = vld [vmem:[%s1297_s0 + $0x18] sm:$0xff]  ;;  %v30_v40 = vld [vmem:[%s1297_s0 + $0x10] sm:$0xff]  ;;  %v985_v42 = vld [vmem:[%s1298_s1 + $0x148] sm:$0xff]  }
   0xe   :  { %874 = vmatprep.subr.bf16.mxu1 %v965_v14  ;;  %v38_v38 = vpack.c.bf16 %v31_v37, %v31_v37  ;;  %v37_v41 = vpack.c.bf16 %v30_v40, %v30_v40  ;;  %v986_v43 = vld [vmem:[%s1298_s1 + $0x108] sm:$0xff]   ;;  %v987_v45 = vld [vmem:[%s1298_s1 + $0x150] sm:$0xff]   ;;  %v989_v47 = vld [vmem:[%s1298_s1 + $0x158] sm:$0xff]  }
   0xf   :  { %853 = vmatpush3.bf16.msra.mxu0 %v964_v13  ;;  %v988_v46 = vld [vmem:[%s1298_s1 + $0x110] sm:$0xff]   ;;  %v990_v48 = vld [vmem:[%s1298_s1 + $0x118] sm:$0xff]   ;;  %v991_v49 = vld [vmem:[%s1298_s1 + $0x160] sm:$0xff]  }
  0x10   :  { %854 = vmatprep.subr.bf16.mxu0 %v967_v16  ;;  %517 = vmatprep.mubr.bf16.mxu1 %v38_v38  ;;  %v992_v50 = vld [vmem:[%s1298_s1 + $0x120] sm:$0xff]   ;;  %v993_v51 = vld [vmem:[%s1298_s1 + $0x168] sm:$0xff]   ;;  %v995_v55 = vld [vmem:[%s1298_s1 + $0x170] sm:$0xff]  }
  0x11   :  { %875 = vmatpush3.bf16.msra.mxu1 %v966_v15  ;;  %v994_v52 = vld [vmem:[%s1298_s1 + $0x128] sm:$0xff]   ;;  %v999_v53 = vld [vmem:[%s1298_s1 + $0x180] sm:$0xff]   ;;  %v34_v57 = vld [vmem:[%s1297_s0 + $0x30] sm:$0xff] }
  0x12   :  { %876 = vmatprep.subr.bf16.mxu1 %v969_v18  ;;  %v33_v54 = vld [vmem:[%s1297_s0 + $0x28] sm:$0xff]  ;;  %v41_v58 = vpack.c.bf16 %v34_v57, %v34_v57 }
  0x13   :  { %855 = vmatpush3.bf16.msra.mxu0 %v968_v17  ;;  %v40_v56 = vpack.c.bf16 %v33_v54, %v33_v54 }
  0x14   :  { %856 = vmatprep.subr.bf16.mxu0 %v971_v20 }
  0x15   :  { %877 = vmatpush3.bf16.msra.mxu1 %v970_v19 }
  0x16   :  { %878 = vmatprep.subr.bf16.mxu1 %v973_v22 }
  0x17   :  { %857 = vmatpush3.bf16.msra.mxu0 %v972_v21 }
  0x18   :  { %858 = vmatprep.subr.bf16.mxu0 %v975_v24 }
  0x19   :  { %879 = vmatpush3.bf16.msra.mxu1 %v974_v23 }
  0x1a   :  { %880 = vmatprep.subr.bf16.mxu1 %v977_v26 }
  0x1b   :  { %859 = vmatpush3.bf16.msra.mxu0 %v976_v25 }
  0x1c   :  { %860 = vmatprep.subr.bf16.mxu0 %v979_v28 }
  0x1d   :  { %881 = vmatpush3.bf16.msra.mxu1 %v978_v27 }
  0x1e   :  { %882 = vmatprep.subr.bf16.mxu1 %v981_v30 }
  0x1f   :  { %861 = vmatpush3.bf16.msra.mxu0 %v980_v29 }
  0x20   :  { %890 = vmatprep.subr.bf16.mxu0 %v983_v36 }
  0x21   :  { %883 = vmatpush3.bf16.msra.mxu1 %v982_v33 }
  0x22   :  { %478 = vmatmul.mubr.bf16.vlgmr.msra.gmra.mrb[0].mxu0 %v35_v35  ;;  %922 = vmatprep.subr.bf16.mxu1 %v1034_v44 }
  0x23   :  { %891 = vmatpush3.bf16.msra.mxu0 %v984_v39  ;;  %557 = vmatprep.mubr.bf16.mxu0 %v40_v56 }
  0x24   :  { %518 = vmatmul.mubr.bf16.vlgmr.msra.gmra.mrb[0].mxu1 %v37_v41  ;;  %892 = vmatprep.subr.bf16.mxu0 %v985_v42 }
  0x25   :  { %924 = vmatprep.mubr.msk.bf16.mxu1 %vm1035_vm0, %v1034_v44  ;;  %923 = vmatpush3.bf16.msra.mxu1 %v999_v53 }
  0x26   :  { %928 = vmatprep.subr.bf16.mxu1 %v1034_v44 }
  0x27   :  { %893 = vmatpush3.bf16.msra.mxu0 %v986_v43 }
  0x28   :  { %894 = vmatprep.subr.bf16.mxu0 %v987_v45 }
  0x2b   :  { %895 = vmatpush3.bf16.msra.mxu0 %v988_v46 }
  0x2c   :  { %896 = vmatprep.subr.bf16.mxu0 %v989_v47  ;;  %925 = vmatmul.mubr.msk.bf16.vlgmr.msra.gmra.mrb[4].mxu1 %vm441_vm1, %v41_v58 }
  0x2f   :  { %897 = vmatpush3.bf16.msra.mxu0 %v990_v48 }
  0x30   :  { %898 = vmatprep.subr.bf16.mxu0 %v991_v49 }
  0x33   :  { %899 = vmatpush3.bf16.msra.mxu0 %v992_v50 }
  0x34   :  { %900 = vmatprep.subr.bf16.mxu0 %v993_v51 }
  0x35   :  { %12 = vsyncpa [#allocation3], 0  ;;  %v996_v59 = vld [vmem:[%s1298_s1 + $0x130] sm:$0xff]   ;;  %936 = vmatprep.mubr.msk.bf16.mxu1 %vm1035_vm0, %v1034_v44  ;;  %v997_v60 = vld [vmem:[%s1298_s1 + $0x178] sm:$0xff]   ;;  %vm646_vm2 = vcmask 523264   ;;  %vm715_vm3 = vcmask 261120  }
  0x36   :  { %v998_v61 = vld [vmem:[%s1298_s1 + $0x138] sm:$0xff]   ;;  %v32_v62 = vld [vmem:[%s1297_s0 + $0x20] sm:$0xff]  ;;  %v1001_v1 = vld [vmem:[%s1300_s3 + $0x8] sm:$0xff]  }
  0x37   :  { %901 = vmatpush3.bf16.msra.mxu0 %v994_v52  ;;  %v39_v63 = vpack.c.bf16 %v32_v62, %v32_v62  ;;  %v1000_v0 = vld [vmem:[%s1300_s3] sm:$0xff]   ;;  %v1002_v2 = vld [vmem:[%s1300_s3 + $0x10] sm:$0xff]   ;;  %v1003_v3 = vld [vmem:[%s1300_s3 + $0x18] sm:$0xff]  }
  0x38   :  { %902 = vmatprep.subr.bf16.mxu0 %v995_v55  ;;  %929 = vmatpush3.bf16.msra.mxu1 %v1000_v0  ;;  %v785_v5 = vld [vmem:[%s1299_s2] ss:$0 sm:$0xff]  ;;  %v1005_v31 = vld [vmem:[%s1302_s5 + $0x8] sm:$0xff]  }
  0x39   :  { %930 = vmatprep.subr.bf16.mxu1 %v1034_v44  ;;  %v1004_v29 = vld [vmem:[%s1302_s5] sm:$0xff]  }
  0x3a   :  { %v836_v32 = vld [vmem:[%s1301_s4] ss:$0 sm:$0xff]  ;;  %s1036_s4 = smov [#allocation2]  }
  0x3b   :  { %903 = vmatpush3.bf16.msra.mxu0 %v996_v59  ;;  %v842_v40 = vld [vmem:[%s1303_s6] ss:$0 sm:$0xff]  ;;  %s777_s5 = sshll.u32 %s1036_s4, 4  ;;  %s778_s5 = int_to_ptr.vmem [resolvable:$true] %s777_s5 }
  0x3c   :  { %904 = vmatprep.subr.bf16.mxu0 %v997_v60  ;;  %931 = vmatpush3.bf16.msra.mxu1 %v1001_v1  ;;  %s1010_s6 = scalar_lea.vmem %s778_s5, 128  ;;  %p1015_p1 = scmp.lt.s32.totalorder %s778_s5, %s778_s5 }
  0x3d   :  { %932 = vmatprep.subr.bf16.mxu1 %v1034_v44  ;;  %p1011_p0 = scmp.ne.s32.totalorder %s778_s5, %s1010_s6  ;;  %p1016_p2 = scmp.lt.s32.totalorder %s1010_s6, %s1010_s6 }
  0x3f   :  { %905 = vmatpush3.bf16.msra.mxu0 %v998_v61  ;;  %p1017_p3 = por %p1016_p2, %p1015_p1 }
  0x40   :  { %933 = vmatpush3.bf16.msra.mxu1 %v1002_v2 }
  0x41   :  { %934 = vmatprep.subr.bf16.mxu1 %v1034_v44  ;;  %p1018_p4 = pnand %p1017_p3, %p1011_p0 }
  0x42   :  { %558 = vmatmul.mubr.bf16.vlgmr.msra.gmra.mrb[4].mxu0 %v39_v63 }
  0x44   :  { %935 = vmatpush3.bf16.msra.mxu1 %v1003_v3 }
  0x45   :  { %940 = vmatprep.subr.bf16.mxu1 %v1034_v44 }
  0xf5   :  { %v862_v4 = vpop.f32.mrb[0].mxu0 }
  0xf6   :  { %v863_v6 = vpop.f32.mrb[1].mxu0 }
  0xf7   :  { %v864_v7 = vadd.f32 %v863_v6, %v862_v4  ;;  %v865_v8 = vpop.f32.mrb[2].mxu0  ;;  %v884_v9 = vpop.f32.mrb[0].mxu1 }
  0xf8   :  { %v866_v10 = vpop.f32.mrb[3].mxu0  ;;  %v885_v12 = vpop.f32.mrb[1].mxu1 }
  0xf9   :  { %v480_v11 = vadd.f32 %v864_v7, %v785_v5  ;;  %v886_v13 = vadd.f32 %v885_v12, %v884_v9  ;;  %v887_v14 = vpop.f32.mrb[2].mxu1 }
  0xfa   :  { %v888_v15 = vpop.f32.mrb[3].mxu1 }
  0xfb   :  { %v520_v16 = vadd.f32 %v886_v13, %v480_v11 }
  0xff   :  { %v599_v17 = vpop.f32.mrb[4].mxu1 }
 0x100   :  { %v926_v18 = vpop.f32.mrb[5].mxu1 }
 0x101   :  { %v602_v19 = vpop.f32.mrb[6].mxu1 }
 0x102   :  { %v927_v20 = vpop.f32.mrb[7].mxu1 }
 0x115   :  { %v906_v21 = vpop.f32.mrb[4].mxu0 }
 0x116   :  { %v907_v22 = vpop.f32.mrb[5].mxu0 }
 0x117   :  { %v908_v23 = vadd.f32 %v907_v22, %v906_v21  ;;  %v909_v24 = vpop.f32.mrb[6].mxu0 }
 0x118   :  { %v910_v25 = vpop.f32.mrb[7].mxu0 }
 0x119   :  { %v560_v26 = vadd.f32 %v908_v23, %v520_v16 }
 0x11b   :  { %v600_v27 = vadd.f32 %v599_v17, %v560_v26 }
 0x11d   :  { %v605_v28 = vmax.f32 %v600_v27, 0.0 }
 0x11f   :  { %v606_v30 = vpack.c.bf16 %v605_v28, %v605_v28 }
 0x121   :  { %937 = vmatmul.mubr.msk.bf16.vlgmr.msra.gmra.mrb[8].mxu1 %vm646_vm2, %v606_v30 }
 0x122   :  { %941 = vmatpush3.bf16.msra.mxu1 %v1004_v29  ;;  %944 = vmatprep.mubr.msk.bf16.mxu1 %vm1035_vm0, %v1034_v44 }
 0x123   :  { %942 = vmatprep.subr.bf16.mxu1 %v1034_v44 }
 0x126   :  { %943 = vmatpush3.bf16.msra.mxu1 %v1005_v31 }
 0x1f4   :  { %v684_v33 = vpop.f32.mrb[8].mxu1 }
 0x1f5   :  { %v685_v34 = vadd.f32 %v836_v32, %v684_v33  ;;  %v938_v35 = vpop.f32.mrb[9].mxu1 }
 0x1f6   :  { %v687_v36 = vpop.f32.mrb[10].mxu1 }
 0x1f7   :  { %v690_v37 = vmax.f32 %v685_v34, 0.0  ;;  %v939_v38 = vpop.f32.mrb[11].mxu1 }
 0x1f9   :  { %v691_v39 = vpack.c.bf16 %v690_v37, %v690_v37 }
 0x1fb   :  { %945 = vmatmul.mubr.msk.bf16.vlgmr.msra.gmra.mrb[12].mxu1 %vm715_vm3, %v691_v39 }
 0x2ce   :  { %v753_v41 = vpop.f32.mrb[12].mxu1 }
 0x2cf   :  { %v754_v42 = vadd.f32 %v842_v40, %v753_v41  ;;  %v946_v43 = vpop.f32.mrb[13].mxu1 }
 0x2d0   :  { %v756_v44 = vpop.f32.mrb[14].mxu1 }
 0x2d1   :  { %759 = vmax.xlane.f32.xlu0 %v754_v42  ;;  %v947_v45 = vpop.f32.mrb[15].mxu1 }
 0x35e   :  { %v760_v46 = vpop.xlane.xlu0 %759 }
 0x35f   :  { %v761_v47 = vsub.f32 %v754_v42, %v760_v46 }
 0x361   :  { %v762_v48 = vmul.f32 1.442695, %v761_v47 }
 0x363   :  { %1006 = vpow2.f32 %v762_v48 }
 0x36d   :  { %v1007_v49 = vpop.eup %1006 }
 0x36e   :  { %764 = vadd.xlane.f32.xlu0 %v1007_v49 }
 0x3fb   :  { %v765_v50 = vpop.xlane.xlu0 %764 }
 0x3fc   :  { %1008 = vlog2.f32 %v765_v50 }
 0x406   :  { %v1009_v51 = vpop.eup %1008 }
 0x407   :  { %v767_v52 = vmul.f32 0.6931472, %v1009_v51 }
 0x409   :  { %v768_v53 = vadd.f32 %v767_v52, %v760_v46 }
 0x40b   :  { %v769_v54 = vsub.f32 %v754_v42, %v768_v53 }
 0x40d   :  { %770 = vst [vmem:[#allocation2] sm:$0xff] %v769_v54 }
 0x40e   :  { %1021 = shalt.err (!%p1018_p4)
}
 0x40f   :  { %s1022_s14 = scalar_lea.hbm %s1304_s7, 128 }
 0x410   :  { %p1023_p5 = scmp.ne.s32.totalorder %s1304_s7, %s1022_s14  ;;  %p1026_p6 = scmp.lt.u32.totalorder %s1022_s14, %s1304_s7 }
 0x412   :  { %p1028_p7 = pnand %p1026_p6, %p1023_p5 }
 0x414   :  { %1031 = shalt.err (!%p1028_p7)
}
 0x415   :  { %780 = dma.vmem_to_hbm [thread:$0]  %s778_s5, 128, %s1304_s7, [#allocation3]  }
 0x416   :  { %1032 = dma.done.wait [#allocation3], 128  }
 0x417   :  { %1033 = vsyncadd [#allocation3], 4294967168 }
 0x418   :  { %784 = vsyncpa [#allocation3], 1 }

</bundles_post_ra>
